<compile_context>
chip_gen: v5e
topology: v5e:2x2
jax: 0.10.0
libtpu: 0.0.40
codegen_flags: <defaults>
</compile_context>

<pallas_src>
import functools

import jax
import jax.numpy as jnp
from jax.experimental import pallas as pl
from jax.experimental.pallas import tpu as pltpu


def _make_loss_kernel(margin: float, batch: int, tile_rows: int,
                      steps_per_split: int, eps: float, needs_mask: bool):
    margin = float(margin)
    eps2 = float(eps) * float(eps)

    def kernel(h_ref, p_ref, r_ref, y_ref, out_ref):
        s = pl.program_id(0)          # split (optionally core-parallel)
        j = pl.program_id(1)          # tile within split (reduction axis)

        # Zero this split's resident accumulator block at its first step.
        @pl.when(j == 0)
        def _():
            out_ref[...] = jnp.zeros_like(out_ref)

        h = h_ref[...].astype(jnp.float32)        # (TB, D)
        p = p_ref[...].astype(jnp.float32)        # (TB, D)
        r = r_ref[...].astype(jnp.float32)        # (TB, D)
        y = y_ref[...].astype(jnp.float32)        # (TB, 1)

        a = h * r                                                   # (TB, D)
        dot = jnp.sum(a * p, axis=1, keepdims=True)                 # (TB, 1)
        sa2 = jnp.sum(a * a, axis=1, keepdims=True)                 # (TB, 1)
        sp2 = jnp.sum(p * p, axis=1, keepdims=True)                 # (TB, 1)
        # cosine distance; single rsqrt.  max(||a||*||p||, eps) ==
        # sqrt(max(sa2*sp2, eps^2)), matching PyTorch's eps=1e-8 clamp.
        d = 1.0 - dot * jax.lax.rsqrt(jnp.maximum(sa2 * sp2, eps2))  # (TB, 1)
        hinge = jnp.maximum(margin - d, 0.0)
        losses = 0.5 * (y * d * d + (1.0 - y) * hinge * hinge)      # (TB, 1)

        if needs_mask:
            row0 = (s * steps_per_split + j) * tile_rows

            # Interior tiles: no masking work at all.
            @pl.when(row0 + tile_rows <= batch)
            def _():
                out_ref[...] += jnp.sum(losses)

            # Final partial tile (and any padded / clamped steps): mask rows
            # beyond the real batch.  jnp.where is a select, so garbage in the
            # masked lanes never propagates (denominator is eps-clamped).
            @pl.when(row0 + tile_rows > batch)
            def _():
                rows = row0 + jax.lax.broadcasted_iota(
                    jnp.int32, losses.shape, 0)
                out_ref[...] += jnp.sum(jnp.where(rows < batch, losses, 0.0))
        else:
            out_ref[...] += jnp.sum(losses)

    return kernel


def _reference_loss(h, p, r, labels, margin: float = 1.0, eps: float = 1e-8):
    # Pure-JAX reference mirroring the PyTorch forward exactly.
    h = h.astype(jnp.float32)
    p = p.astype(jnp.float32)
    r = r.astype(jnp.float32)
    a = h * r
    dot = jnp.sum(a * p, axis=1)
    denom = jnp.maximum(
        jnp.linalg.norm(a, axis=1) * jnp.linalg.norm(p, axis=1), eps)
    d = 1.0 - dot / denom
    y = labels.astype(jnp.float32)
    losses = 0.5 * (y * d ** 2 + (1.0 - y) * jnp.maximum(margin - d, 0.0) ** 2)
    return jnp.mean(losses)


def _vmem_budget_bytes() -> int:
    try:
        cap = pltpu.get_tpu_info().vmem_capacity_bytes
    except Exception:  # interpret mode / no TPU info available
        cap = 64 << 20
    # Leave headroom below physical; cap well under v5e/v6e's 128 MiB.
    return int(min(int(0.75 * cap), 96 << 20))


@functools.partial(
    jax.jit,
    static_argnames=("margin", "tile_rows", "num_splits", "eps",
                     "use_kernel", "core_parallel"))
def rotate_loss(h, p, r, labels, *, margin: float = 1.0,
                tile_rows: int | None = None, num_splits: int = 1,
                eps: float = 1e-8, use_kernel: bool | None = None,
                core_parallel: bool = False):
    """Pallas implementation of ROTATELoss.forward over precomputed embeddings.

    h, p, r: (B, D) embeddings (f32 or bf16 -- bf16 halves HBM traffic for
    this bandwidth-bound kernel). labels: (B,) {0,1}. Returns scalar f32 mean.
    On v7x, pass num_splits=2, core_parallel=True to shard across both TCs.
    """
    B, D = h.shape

    # Small batches: one or two grid steps are dominated by pallas_call fixed
    # overhead; XLA fuses this elementwise+reduce pattern well.
    if use_kernel is None:
        use_kernel = B > 1024
    if not use_kernel:
        return _reference_loss(h, p, r, labels, margin, eps)

    labels_f = labels.astype(jnp.float32).reshape(B, 1)

    vmem_limit = _vmem_budget_bytes()

    # Batch tile: derived from VMEM budget if not given.
    # Block buffers: 3 inputs x 2 pipeline buffers x tb x D x itemsize;
    # plus ~4 tile-sized f32 temporaries (h/p/r upcasts and a = h*r).
    if tile_rows is None:
        in_bytes = h.dtype.itemsize
        per_row = 3 * 2 * D * in_bytes + 4 * D * 4
        tile_rows = max(8, (int(0.8 * vmem_limit) // per_row))
        tile_rows = int(min(tile_rows, 2048))

    tb = min(int(tile_rows), B)
    if tb != B and tb % 8 != 0:
        tb = max(8, (tb // 8) * 8)

    total_tiles = pl.cdiv(B, tb)
    ns = max(1, min(int(num_splits), total_tiles))
    steps = pl.cdiv(total_tiles, ns)

    # Masking is only compiled in when some step can see rows >= B
    # (partial last tile or padded steps from ns*steps > total_tiles).
    needs_mask = (B % tb != 0) or (ns * steps != total_tiles)

    # Clamp the block index explicitly so padded steps never index past the
    # last block (their contribution is masked to zero in-kernel).
    last_block = total_tiles - 1

    def row_map(s, j):
        return (jnp.minimum(s * steps + j, last_block), 0)

    emb_spec = pl.BlockSpec((tb, D), row_map)
    lab_spec = pl.BlockSpec((tb, 1), row_map)
    out_spec = pl.BlockSpec((1, 8, 128), lambda s, j: (s, 0, 0))

    split_sem = pltpu.CORE_PARALLEL if core_parallel else "parallel"

    out = pl.pallas_call(
        _make_loss_kernel(margin, B, tb, steps, eps, needs_mask),
        out_shape=jax.ShapeDtypeStruct((ns, 8, 128), jnp.float32),
        grid_spec=pltpu.PrefetchScalarGridSpec(
            num_scalar_prefetch=0,
            grid=(ns, steps),
            in_specs=[emb_spec, emb_spec, emb_spec, lab_spec],
            out_specs=out_spec,
        ),
        compiler_params=pltpu.CompilerParams(
            dimension_semantics=(split_sem, "arbitrary"),
            vmem_limit_bytes=vmem_limit),
    )(h, p, r, labels_f)

    # Reduce per-split partial sums; mean over the true batch size.
    return jnp.sum(out[:, 0, 0]) / jnp.float32(B)


if __name__ == "__main__":
    key = jax.random.PRNGKey(0)

    # --- Test 1: f32, non-multiple batch, multi-tile (mask path) -----------
    k_h, k_p, k_r, k_l = jax.random.split(key, 4)
    B, D = 40, 32
    h = jax.random.normal(k_h, (B, D), dtype=jnp.float32)
    p = jax.random.normal(k_p, (B, D), dtype=jnp.float32)
    r = jax.random.normal(k_r, (B, D), dtype=jnp.float32)
    labels = jax.random.bernoulli(k_l, 0.5, (B,)).astype(jnp.int32)

    loss = jax.block_until_ready(
        rotate_loss(h, p, r, labels, margin=1.0, tile_rows=16,
                    use_kernel=True))
    ref = jax.block_until_ready(_reference_loss(h, p, r, labels, margin=1.0))
    assert jnp.allclose(loss, ref, rtol=1e-5, atol=1e-5), (loss, ref)

    # --- Test 2: bf16 inputs, auto tile sizing (single full-batch tile) ----
    k_h2, k_p2, k_r2, k_l2 = jax.random.split(jax.random.PRNGKey(1), 4)
    B2, D2 = 64, 128
    h2 = jax.random.normal(k_h2, (B2, D2), dtype=jnp.float32).astype(jnp.bfloat16)
    p2 = jax.random.normal(k_p2, (B2, D2), dtype=jnp.float32).astype(jnp.bfloat16)
    r2 = jax.random.normal(k_r2, (B2, D2), dtype=jnp.float32).astype(jnp.bfloat16)
    labels2 = jax.random.bernoulli(k_l2, 0.5, (B2,)).astype(jnp.int32)

    loss2 = jax.block_until_ready(
        rotate_loss(h2, p2, r2, labels2, margin=1.0, use_kernel=True))
    ref2 = jax.block_until_ready(
        _reference_loss(h2, p2, r2, labels2, margin=1.0))
    assert jnp.allclose(loss2, ref2, rtol=1e-4, atol=1e-5), (loss2, ref2)

    print("KERNEL_OK")
</pallas_src>

<mosaic_0001>
module attributes {stable_mosaic.version = 11 : i64} {
  func.func @kernel(%arg0: i32, %arg1: i32, %arg2: memref<16x32xf32, #tpu.memory_space<vmem>>, %arg3: memref<16x32xf32, #tpu.memory_space<vmem>>, %arg4: memref<16x32xf32, #tpu.memory_space<vmem>>, %arg5: memref<16x1xf32, #tpu.memory_space<vmem>>, %arg6: memref<1x8x128xf32, #tpu.memory_space<vmem>>) attributes {dimension_semantics = [#tpu.dimension_semantics<parallel>, #tpu.dimension_semantics<arbitrary>], iteration_bounds = array<i64: 1, 3>, scalar_prefetch = 0 : i64, scratch_operands = 0 : i64, tpu.core_type = #tpu.core_type<tc>, window_params = [{transform_indices = @transform_0, window_bounds = array<i64: 16, 32>}, {transform_indices = @transform_1, window_bounds = array<i64: 16, 32>}, {transform_indices = @transform_2, window_bounds = array<i64: 16, 32>}, {transform_indices = @transform_3, window_bounds = array<i64: 16, 1>}, {transform_indices = @transform_4, window_bounds = array<i64: 1, 8, 128>}]} {
    %c0_i32 = arith.constant 0 : i32
    %0 = arith.cmpi eq, %arg1, %c0_i32 : i32
    %1 = arith.extui %0 : i1 to i32
    %c0_i32_0 = arith.constant 0 : i32
    %2 = arith.cmpi ne, %1, %c0_i32_0 : i32
    scf.if %2 {
      %cst_21 = arith.constant 0.000000e+00 : f32
      %48 = vector.broadcast %cst_21 : f32 to vector<1x8x128xf32>
      %c0_22 = arith.constant 0 : index
      %c0_23 = arith.constant 0 : index
      %c0_24 = arith.constant 0 : index
      %49 = vector.load %arg6[%c0_22, %c0_23, %c0_24] : memref<1x8x128xf32, #tpu.memory_space<vmem>>, vector<1x8x128xf32>
      tpu.vector_store %arg6[%c0_22, %c0_23, %c0_24], %48 {strides = array<i32>} : memref<1x8x128xf32, #tpu.memory_space<vmem>>, vector<1x8x128xf32>,
    } else {
    }
    %c0 = arith.constant 0 : index
    %c0_1 = arith.constant 0 : index
    %3 = vector.load %arg2[%c0, %c0_1] : memref<16x32xf32, #tpu.memory_space<vmem>>, vector<16x32xf32>
    %c0_2 = arith.constant 0 : index
    %c0_3 = arith.constant 0 : index
    %4 = vector.load %arg3[%c0_2, %c0_3] : memref<16x32xf32, #tpu.memory_space<vmem>>, vector<16x32xf32>
    %c0_4 = arith.constant 0 : index
    %c0_5 = arith.constant 0 : index
    %5 = vector.load %arg4[%c0_4, %c0_5] : memref<16x32xf32, #tpu.memory_space<vmem>>, vector<16x32xf32>
    %c0_6 = arith.constant 0 : index
    %c0_7 = arith.constant 0 : index
    %6 = vector.load %arg5[%c0_6, %c0_7] : memref<16x1xf32, #tpu.memory_space<vmem>>, vector<16x1xf32>
    %7 = arith.mulf %3, %5 : vector<16x32xf32>
    %8 = arith.mulf %7, %4 : vector<16x32xf32>
    %cst = arith.constant dense<0.000000e+00> : vector<16xf32>
    %9 = vector.multi_reduction <add>, %8, %cst [1] : vector<16x32xf32> to vector<16xf32>
    %10 = vector.shape_cast %9 : vector<16xf32> to vector<16x1xf32>
    %11 = arith.mulf %7, %7 : vector<16x32xf32>
    %cst_8 = arith.constant dense<0.000000e+00> : vector<16xf32>
    %12 = vector.multi_reduction <add>, %11, %cst_8 [1] : vector<16x32xf32> to vector<16xf32>
    %13 = vector.shape_cast %12 : vector<16xf32> to vector<16x1xf32>
    %14 = arith.mulf %4, %4 : vector<16x32xf32>
    %cst_9 = arith.constant dense<0.000000e+00> : vector<16xf32>
    %15 = vector.multi_reduction <add>, %14, %cst_9 [1] : vector<16x32xf32> to vector<16xf32>
    %16 = vector.shape_cast %15 : vector<16xf32> to vector<16x1xf32>
    %17 = arith.mulf %13, %16 : vector<16x1xf32>
    %cst_10 = arith.constant 1.000000e-16 : f32
    %18 = vector.broadcast %cst_10 : f32 to vector<16x1xf32>
    %19 = arith.maximumf %17, %18 : vector<16x1xf32>
    %20 = math.rsqrt %19 : vector<16x1xf32>
    %21 = arith.mulf %10, %20 : vector<16x1xf32>
    %cst_11 = arith.constant 1.000000e+00 : f32
    %22 = vector.broadcast %cst_11 : f32 to vector<16x1xf32>
    %23 = arith.subf %22, %21 : vector<16x1xf32>
    %cst_12 = arith.constant 1.000000e+00 : f32
    %24 = vector.broadcast %cst_12 : f32 to vector<16x1xf32>
    %25 = arith.subf %24, %23 : vector<16x1xf32>
    %cst_13 = arith.constant 0.000000e+00 : f32
    %26 = vector.broadcast %cst_13 : f32 to vector<16x1xf32>
    %27 = arith.maximumf %25, %26 : vector<16x1xf32>
    %28 = arith.mulf %6, %23 : vector<16x1xf32>
    %29 = arith.mulf %28, %23 : vector<16x1xf32>
    %cst_14 = arith.constant 1.000000e+00 : f32
    %30 = vector.broadcast %cst_14 : f32 to vector<16x1xf32>
    %31 = arith.subf %30, %6 : vector<16x1xf32>
    %32 = arith.mulf %31, %27 : vector<16x1xf32>
    %33 = arith.mulf %32, %27 : vector<16x1xf32>
    %34 = arith.addf %29, %33 : vector<16x1xf32>
    %cst_15 = arith.constant 5.000000e-01 : f32
    %35 = vector.broadcast %cst_15 : f32 to vector<16x1xf32>
    %36 = arith.mulf %35, %34 : vector<16x1xf32>
    %c3_i32 = arith.constant 3 : i32
    %37 = arith.muli %arg0, %c3_i32 : i32
    %38 = arith.addi %37, %arg1 : i32
    %c16_i32 = arith.constant 16 : i32
    %39 = arith.muli %38, %c16_i32 : i32
    %c16_i32_16 = arith.constant 16 : i32
    %40 = arith.addi %39, %c16_i32_16 : i32
    %c40_i32 = arith.constant 40 : i32
    %41 = arith.cmpi sle, %40, %c40_i32 : i32
    %42 = arith.extui %41 : i1 to i32
    %c0_i32_17 = arith.constant 0 : i32
    %43 = arith.cmpi ne, %42, %c0_i32_17 : i32
    scf.if %43 {
      %c0_21 = arith.constant 0 : index
      %c0_22 = arith.constant 0 : index
      %c0_23 = arith.constant 0 : index
      %48 = vector.load %arg6[%c0_21, %c0_22, %c0_23] : memref<1x8x128xf32, #tpu.memory_space<vmem>>, vector<1x8x128xf32>
      %49 = vector.shape_cast %36 : vector<16x1xf32> to vector<1x16x1xf32>
      %cst_24 = arith.constant dense<0.000000e+00> : vector<1xf32>
      %50 = vector.multi_reduction <add>, %49, %cst_24 [1, 2] : vector<1x16x1xf32> to vector<1xf32>
      %51 = vector.shape_cast %50 : vector<1xf32> to vector<1x1x1xf32>
      %52 = vector.extract %51[0, 0, 0] : f32 from vector<1x1x1xf32>
      %53 = vector.broadcast %52 : f32 to vector<1x8x128xf32>
      %54 = arith.addf %48, %53 : vector<1x8x128xf32>
      %c0_25 = arith.constant 0 : index
      %c0_26 = arith.constant 0 : index
      %c0_27 = arith.constant 0 : index
      %55 = vector.load %arg6[%c0_25, %c0_26, %c0_27] : memref<1x8x128xf32, #tpu.memory_space<vmem>>, vector<1x8x128xf32>
      tpu.vector_store %arg6[%c0_25, %c0_26, %c0_27], %54 {strides = array<i32>} : memref<1x8x128xf32, #tpu.memory_space<vmem>>, vector<1x8x128xf32>,
    } else {
    }
    %c16_i32_18 = arith.constant 16 : i32
    %44 = arith.addi %39, %c16_i32_18 : i32
    %c40_i32_19 = arith.constant 40 : i32
    %45 = arith.cmpi sgt, %44, %c40_i32_19 : i32
    %46 = arith.extui %45 : i1 to i32
    %c0_i32_20 = arith.constant 0 : i32
    %47 = arith.cmpi ne, %46, %c0_i32_20 : i32
    scf.if %47 {
      %48 = tpu.iota {dimensions = array<i32: 0>} : vector<16x1xi32>
      %49 = vector.broadcast %39 : i32 to vector<16x1xi32>
      %50 = arith.addi %49, %48 : vector<16x1xi32>
      %c0_21 = arith.constant 0 : index
      %c0_22 = arith.constant 0 : index
      %c0_23 = arith.constant 0 : index
      %51 = vector.load %arg6[%c0_21, %c0_22, %c0_23] : memref<1x8x128xf32, #tpu.memory_space<vmem>>, vector<1x8x128xf32>
      %c40_i32_24 = arith.constant 40 : i32
      %52 = vector.broadcast %c40_i32_24 : i32 to vector<16x1xi32>
      %53 = arith.cmpi slt, %50, %52 : vector<16x1xi32>
      %cst_25 = arith.constant 0.000000e+00 : f32
      %54 = vector.broadcast %cst_25 : f32 to vector<16x1xf32>
      %55 = arith.select %53, %36, %54 : vector<16x1xi1>, vector<16x1xf32>
      %56 = vector.shape_cast %55 : vector<16x1xf32> to vector<1x16x1xf32>
      %cst_26 = arith.constant dense<0.000000e+00> : vector<1xf32>
      %57 = vector.multi_reduction <add>, %56, %cst_26 [1, 2] : vector<1x16x1xf32> to vector<1xf32>
      %58 = vector.shape_cast %57 : vector<1xf32> to vector<1x1x1xf32>
      %59 = vector.extract %58[0, 0, 0] : f32 from vector<1x1x1xf32>
      %60 = vector.broadcast %59 : f32 to vector<1x8x128xf32>
      %61 = arith.addf %51, %60 : vector<1x8x128xf32>
      %c0_27 = arith.constant 0 : index
      %c0_28 = arith.constant 0 : index
      %c0_29 = arith.constant 0 : index
      %62 = vector.load %arg6[%c0_27, %c0_28, %c0_29] : memref<1x8x128xf32, #tpu.memory_space<vmem>>, vector<1x8x128xf32>
      tpu.vector_store %arg6[%c0_27, %c0_28, %c0_29], %61 {strides = array<i32>} : memref<1x8x128xf32, #tpu.memory_space<vmem>>, vector<1x8x128xf32>,
    } else {
    }
    return
  }
  func.func @transform_0(%arg0: i32, %arg1: i32) -> (i32, i32) {
    %c3_i32 = arith.constant 3 : i32
    %0 = arith.muli %arg0, %c3_i32 : i32
    %1 = arith.addi %0, %arg1 : i32
    %c2_i32 = arith.constant 2 : i32
    %2 = arith.minsi %1, %c2_i32 : i32
    %c0_i32 = arith.constant 0 : i32
    %c0_i32_0 = arith.constant 0 : i32
    return %2, %c0_i32 : i32, i32
  }
  func.func @transform_1(%arg0: i32, %arg1: i32) -> (i32, i32) {
    %c3_i32 = arith.constant 3 : i32
    %0 = arith.muli %arg0, %c3_i32 : i32
    %1 = arith.addi %0, %arg1 : i32
    %c2_i32 = arith.constant 2 : i32
    %2 = arith.minsi %1, %c2_i32 : i32
    %c0_i32 = arith.constant 0 : i32
    %c0_i32_0 = arith.constant 0 : i32
    return %2, %c0_i32 : i32, i32
  }
  func.func @transform_2(%arg0: i32, %arg1: i32) -> (i32, i32) {
    %c3_i32 = arith.constant 3 : i32
    %0 = arith.muli %arg0, %c3_i32 : i32
    %1 = arith.addi %0, %arg1 : i32
    %c2_i32 = arith.constant 2 : i32
    %2 = arith.minsi %1, %c2_i32 : i32
    %c0_i32 = arith.constant 0 : i32
    %c0_i32_0 = arith.constant 0 : i32
    return %2, %c0_i32 : i32, i32
  }
  func.func @transform_3(%arg0: i32, %arg1: i32) -> (i32, i32) {
    %c3_i32 = arith.constant 3 : i32
    %0 = arith.muli %arg0, %c3_i32 : i32
    %1 = arith.addi %0, %arg1 : i32
    %c2_i32 = arith.constant 2 : i32
    %2 = arith.minsi %1, %c2_i32 : i32
    %c0_i32 = arith.constant 0 : i32
    %c0_i32_0 = arith.constant 0 : i32
    return %2, %c0_i32 : i32, i32
  }
  func.func @transform_4(%arg0: i32, %arg1: i32) -> (i32, i32, i32) {
    %c0_i32 = arith.constant 0 : i32
    %c0_i32_0 = arith.constant 0 : i32
    %c0_i32_1 = arith.constant 0 : i32
    return %arg0, %c0_i32, %c0_i32_0 : i32, i32, i32
  }
}

</mosaic_0001>

<bundles_post_ra>
// kernel: rotate_loss.1
= control target key start
LH: loop header
LB: loop body
LE: loop exit
PB: predicated region body
PF: predicated region fallthrough
CT: control target
= control target key end

     0   :  { %s807_s15 = smov 0   ;;  %s809_s16 = smov 0   ;;  %s885_s0 = inlined_call_operand.vmem [shape: f32[40,32], index: 0, kind: input, shape index: {}]   ;;  %s886_s1 = inlined_call_operand.vmem [shape: f32[40,32], index: 1, kind: input, shape index: {}]   ;;  %s887_s2 = inlined_call_operand.vmem [shape: f32[40,32], index: 2, kind: input, shape index: {}]   ;;  %s888_s3 = inlined_call_operand.vmem [shape: f32[40,1], index: 3, kind: input, shape index: {}]   ;;  %s889_s4 = inlined_call_operand.vmem [shape: f32[1,8,128], index: 4, kind: output, shape index: {}]  }
   0x1   :  { %s811_s17 = smov 0  }
   0x2 LB: > { %s23_s18 = sadd.s32 1, %s775_s16  ;;  %p708_p0 = scmp.ge.s32.totalorder %s779_s17, 1  ;;  %s779_s17 = sphi %s811_s17, %s14_s17   ;;  %s775_s16 = sphi %s809_s16, %s891_s16   ;;  %s771_s15 = sphi %s807_s15, %s890_s15  }
   0x3   : > { %p24_p1 = scmp.ge.s32.totalorder %s23_s18, 3  ;;  %p304_p2 = scmp.lt.s32.totalorder %s779_s17, 4 }
   0x5   : > { %s893_s18 = smov (%p24_p1, %s23_s18), 0  ;;  %p305_p3 = pnand %p708_p0, %p304_p2 }
   0x6   : > { %p378_p4 = scmp.lt.s32.totalorder (!%p305_p3), %s771_s15, 2  ;;  %p717_p6 = scmp.ne.s32.totalorder (!%p305_p3), %s771_s15, 0 }
   0x7   : > { %308 = sbr.rel (%p305_p3) target bundleno = 580 (0x244), region = 36 }
   0xc   : > { %s379_s19 = scalar_select %p378_p4, %s771_s15, 2 }
   0xe   : > { %s709_s20 = sshll.u32 %s379_s19, 1 }
   0xf   : > { %p385_p5 = scmp.lt.s32.totalorder %s709_s20, 4 }
  0x10   : > { %471 = sbr.rel (%p717_p6) target bundleno = 23 (0x17), region = 40 }
  0x11   : > { %s895_s20 = smov (!%p385_p5, %s709_s20), 4 }
  0x12   : > { %s710_s21 = sshll.u32 %s895_s20, 3 }
  0x13   : > { %s388_s24 = scalar_lea.vmem %s885_s0, %s710_s21  ;;  %s410_s27 = scalar_lea.vmem %s886_s1, %s710_s21 }
  0x14   : > { %s432_s30 = scalar_lea.vmem %s887_s2, %s710_s21  ;;  %s841_s7 = scalar_lea.vmem %s888_s3, %s710_s21 }
  0x15   : > { %v781_v0 = vmov 0.0  }
  0x16   : > { %472 = vst [vmem:[%s889_s4] sm:$0xff] %v781_v0 }
  0x17 PF: > { %v475_v1 = vld [vmem:[%s410_s27] sm:$0xff]  ;;  %vm485_vm0 = vcmask 261120   ;;  %v474_v6 = vld [vmem:[%s388_s24 + $0x8] sm:$0xff]  ;;  %s718_s10 = sshll.u32 %s771_s15, 4 }
  0x18   : > { %v473_v2 = vld [vmem:[%s388_s24] sm:$0xff]  ;;  %v500_v4 = vmul.f32 %v475_v1, %v475_v1  ;;  %v478_v7 = vld [vmem:[%s432_s30 + $0x8] sm:$0xff]  ;;  %s856_s11 = sadd.s32 16, %s718_s10 }
  0x19   : > { %v477_v3 = vld [vmem:[%s432_s30] sm:$0xff]  ;;  %v476_v8 = vld [vmem:[%s410_s27 + $0x8] sm:$0xff]  ;;  %v482_v11 = vmul.f32 %v478_v7, %v474_v6  ;;  %p719_p7 = scmp.gt.s32.totalorder %s856_s11, 40 }
  0x1a   : > { %v481_v5 = vmul.f32 %v477_v3, %v473_v2  ;;  %v502_v9 = vsel %vm485_vm0, %v500_v4, 0.0  ;;  %v501_v14 = vmul.f32 %v476_v8, %v476_v8  ;;  %v479_v43 = vld [vmem:[%s841_s7] sm:$0xff]  ;;  %v480_v57 = vld [vmem:[%s841_s7 + $0x8] sm:$0xff] }
  0x1b   : > { %503 = vadd.xlane.f32.xlu1 %v502_v9  ;;  %v493_v16 = vmul.f32 %v482_v11, %v482_v11  ;;  %v484_v17 = vmul.f32 %v482_v11, %v476_v8  ;;  %v544_v45 = vsub.f32 1.0, %v479_v43  ;;  %v545_v59 = vsub.f32 1.0, %v480_v57 }
  0x1c   : > { %v492_v10 = vmul.f32 %v481_v5, %v481_v5  ;;  %v483_v12 = vmul.f32 %v481_v5, %v475_v1  ;;  %v505_v18 = vsel %vm485_vm0, %v501_v14, 0.0 }
  0x1d   : > { %v497_v19 = vsel %vm485_vm0, %v493_v16, 0.0  ;;  %v489_v20 = vsel %vm485_vm0, %v484_v17, 0.0 }
  0x1e   : > { %v494_v13 = vsel %vm485_vm0, %v492_v10, 0.0  ;;  %v486_v15 = vsel %vm485_vm0, %v483_v12, 0.0 }
  0x1f   : > { %495 = vadd.xlane.f32.xlu0 %v494_v13  ;;  %487 = vadd.xlane.f32.xlu2 %v486_v15 }
  0x23   : > { %506 = vadd.xlane.f32.xlu1 %v505_v18 }
  0x27   : > { %498 = vadd.xlane.f32.xlu0 %v497_v19  ;;  %490 = vadd.xlane.f32.xlu2 %v489_v20 }
  0x8e   : > { %v504_v21 = vpop.xlane.xlu1 %503 }
  0x92   : > { %v496_v22 = vpop.xlane.xlu0 %495  ;;  %v488_v34 = vpop.xlane.xlu2 %487 }
  0x93   : > { %v508_v23 = vmul.f32 %v504_v21, %v496_v22 }
  0x95   : > { %v510_v24 = vmax.f32 %v508_v23, 1e-16 }
  0x96   : > { %v507_v25 = vpop.xlane.xlu1 %506 }
  0x97   : > { %753 = vrsqrt.f32 %v510_v24  ;;  %vm518_vm2 = vweird.f32 %v510_v24 }
  0x9a   : > { %v499_v26 = vpop.xlane.xlu0 %498  ;;  %v491_v48 = vpop.xlane.xlu2 %490 }
  0x9b   : > { %v509_v27 = vmul.f32 %v507_v25, %v499_v26 }
  0x9d   : > { %v754_v28 = vpop.eup %753  ;;  %v511_v29 = vmax.f32 %v509_v27, 1e-16 }
  0x9e   : > { %v513_v30 = vmul.f32 %v754_v28, %v510_v24  ;;  %vm519_vm1 = vweird.f32 %v754_v28 }
  0x9f   : > { %755 = vrsqrt.f32 %v511_v29  ;;  %vm520_vm3 = vmor %vm518_vm2, %vm519_vm1  ;;  %vm528_vm5 = vweird.f32 %v511_v29 }
  0xa0   : > { %v514_v31 = vmul.f32 %v754_v28, %v513_v30 }
  0xa2   : > { %v515_v32 = vmul.f32 0.5, %v514_v31 }
  0xa4   : > { %v516_v33 = vsub.f32 1.5, %v515_v32 }
  0xa5   : > { %v756_v35 = vpop.eup %755 }
  0xa6   : > { %v523_v36 = vmul.f32 %v756_v35, %v511_v29  ;;  %v517_v37 = vmul.f32 %v754_v28, %v516_v33  ;;  %vm529_vm4 = vweird.f32 %v756_v35 }
  0xa7   : > { %vm530_vm6 = vmor %vm528_vm5, %vm529_vm4 }
  0xa8   : > { %v524_v38 = vmul.f32 %v756_v35, %v523_v36  ;;  %v521_v39 = vsel %vm520_vm3, %v754_v28, %v517_v37 }
  0xa9   : > { %v532_v40 = vmul.f32 %v521_v39, %v488_v34 }
  0xaa   : > { %v525_v41 = vmul.f32 0.5, %v524_v38 }
  0xab   : > { %v534_v42 = vsub.f32 1.0, %v532_v40 }
  0xac   : > { %v526_v44 = vsub.f32 1.5, %v525_v41 }
  0xad   : > { %v536_v46 = vsub.f32 1.0, %v534_v42  ;;  %v540_v50 = vmul.f32 %v534_v42, %v479_v43 }
  0xae   : > { %v527_v47 = vmul.f32 %v756_v35, %v526_v44 }
  0xaf   : > { %v538_v49 = vmax.f32 %v536_v46, 0.0  ;;  %v542_v54 = vmul.f32 %v540_v50, %v534_v42 }
  0xb0   : > { %v531_v51 = vsel %vm530_vm6, %v756_v35, %v527_v47 }
  0xb1   : > { %v546_v52 = vmul.f32 %v544_v45, %v538_v49  ;;  %v533_v53 = vmul.f32 %v531_v51, %v491_v48 }
  0xb3   : > { %v548_v55 = vmul.f32 %v546_v52, %v538_v49  ;;  %v535_v56 = vsub.f32 1.0, %v533_v53 }
  0xb5   : > { %v550_v58 = vadd.f32 %v548_v55, %v542_v54  ;;  %v537_v60 = vsub.f32 1.0, %v535_v56  ;;  %v541_v63 = vmul.f32 %v535_v56, %v480_v57 }
  0xb7   : > { %v552_v61 = vmul.f32 0.5, %v550_v58  ;;  %v539_v62 = vmax.f32 %v537_v60, 0.0  ;;  %v543_v1 = vmul.f32 %v541_v63, %v535_v56 }
  0xb9   : > { %v547_v0 = vmul.f32 %v545_v59, %v539_v62 }
  0xbb   : > { %v549_v2 = vmul.f32 %v547_v0, %v539_v62  ;;  %561 = sbr.rel (%p719_p7) target bundleno = 378 (0x17a), region = 44 }
  0xbd   : > { %v551_v3 = vadd.f32 %v549_v2, %v543_v1 }
  0xbf   : > { %v553_v4 = vmul.f32 0.5, %v551_v3 }
  0xc0   : > { %vm563_vm7 = vcmask 7168   ;;  %v562_v15 = vld [vmem:[%s889_s4] sm:$0xff] }
  0xc1   : > { %v564_v5 = vsel %vm563_vm7, %v552_v61, 0.0  ;;  %v565_v6 = vsel %vm563_vm7, %v553_v4, 0.0 }
  0xc2   : > { %v566_v7 = vadd.f32 %v565_v6, %v564_v5 }
  0xc4   : > { %567 = vadd.xlane.f32.xlu0 %v566_v7 }
 0x137   : > { %v568_v8 = vpop.xlane.xlu0 %567 }
 0x138   : > { %v569_v9 = vrot.slane %v568_v8, 4 }
 0x13a   : > { %v570_v10 = vadd.f32 %v569_v9, %v568_v8 }
 0x13c   : > { %v571_v11 = vrot.slane %v570_v10, 2 }
 0x13e   : > { %v572_v12 = vadd.f32 %v571_v11, %v570_v10 }
 0x140   : > { %v573_v13 = vrot.slane %v572_v12, 1 }
 0x142   : > { %v574_v14 = vadd.f32 %v573_v13, %v572_v12 }
 0x144   : > { %724 = vpush %v574_v14 }
 0x175   : > { %s725_s14 = spop %724 }
 0x176   : > { %v576_v16 = vstv %s725_s14 }
 0x177   : > { %v577_v17 = vadd.f32 %v576_v16, %v562_v15 }
 0x179   : > { %578 = vst [vmem:[%s889_s4] sm:$0xff] %v577_v17 }
 0x17a PF: > { %p720_p8 = scmp.le.s32.totalorder %s856_s11, 40 }
 0x17c   : > { %582 = sbr.rel (%p720_p8) target bundleno = 580 (0x244), region = 48 }
 0x181   : > { %v583_v18 = vlaneseq  ;;  %v586_v19 = vstv %s718_s10  ;;  %vm594_vm8 = vcmask 7168   ;;  %v589_v36 = vld [vmem:[%s889_s4] sm:$0xff] }
 0x183   : > { %v584_v20 = vshrl.u32 %v583_v18, 7 }
 0x185   : > { %v585_v21 = vadd.s32 8, %v584_v20  ;;  %v587_v22 = vadd.s32 %v586_v19, %v584_v20 }
 0x187   : > { %v588_v23 = vadd.s32 %v586_v19, %v585_v21  ;;  %vm590_vm9 = vcmp.lt.s32.totalorder %v587_v22, 40 }
 0x188   : > { %v592_v24 = vsel %vm590_vm9, %v552_v61, 0.0 }
 0x189   : > { %vm591_vm10 = vcmp.lt.s32.totalorder %v588_v23, 40  ;;  %v595_v25 = vsel %vm594_vm8, %v592_v24, 0.0 }
 0x18a   : > { %v593_v26 = vsel %vm591_vm10, %v553_v4, 0.0 }
 0x18b   : > { %v596_v27 = vsel %vm594_vm8, %v593_v26, 0.0 }
 0x18c   : > { %v597_v28 = vadd.f32 %v596_v27, %v595_v25 }
 0x18e   : > { %598 = vadd.xlane.f32.xlu0 %v597_v28 }
 0x201   : > { %v599_v29 = vpop.xlane.xlu0 %598 }
 0x202   : > { %v600_v30 = vrot.slane %v599_v29, 4 }
 0x204   : > { %v601_v31 = vadd.f32 %v600_v30, %v599_v29 }
 0x206   : > { %v602_v32 = vrot.slane %v601_v31, 2 }
 0x208   : > { %v603_v33 = vadd.f32 %v602_v32, %v601_v31 }
 0x20a   : > { %v604_v34 = vrot.slane %v603_v33, 1 }
 0x20c   : > { %v605_v35 = vadd.f32 %v604_v34, %v603_v33 }
 0x20e   : > { %726 = vpush %v605_v35 }
 0x23f   : > { %s727_s22 = spop %726 }
 0x240   : > { %v607_v37 = vstv %s727_s22 }
 0x241   : > { %v608_v38 = vadd.f32 %v607_v37, %v589_v36 }
 0x243   : > { %609 = vst [vmem:[%s889_s4] sm:$0xff] %v608_v38 }
 0x244 PF: > { %s14_s17 = sadd.s32 1, %s779_s17   ;;  %s890_s15 = smov %s775_s16 }
 0x245   : > { %p11_p9 = scmp.ge.s32.totalorder %s14_s17, 5   ;;  %s891_s16 = smov %s893_s18 }
 0x247   :  { %13 = sbr.rel (!%p11_p9) target bundleno = 2 (0x2), region = 87 }

</bundles_post_ra>
